<compile_context>
chip_gen: v7x
topology: tpu7x:2x2x1
jax: 0.10.0
libtpu: 0.0.40
codegen_flags: <defaults>
</compile_context>

<pallas_src>
import functools

import jax
import jax.numpy as jnp
from jax.experimental import pallas as pl
from jax.experimental.pallas import tpu as pltpu

NUM_PRIORS = 8          # number of lane proposals emitted by the rpn head
HIDDEN = 32             # neck / head hidden channel width
C_IN = 4                # input image channels
C1 = 16                 # backbone stage-1 channels
C2 = 32                 # backbone stage-2 channels

# 3x3 conv tap order (kh-major, then kw) -- matches the (kh, kw, Cin) row
# layout of the im2col-format conv weights in init_params.
_TAPS = [(-1, -1), (-1, 0), (-1, 1),
         (0, -1), (0, 0), (0, 1),
         (1, -1), (1, 0), (1, 1)]

# Row offsets inside the packed bf16 weight slab.  Every offset is a multiple
# of 16 so each in-kernel row slice is bf16-sublane-tile aligned.
_W1, _W2M1, _W20, _W2P1 = 0, 256, 512, 768          # stage-1 / stage-2 conv GEMMs
_NW, _RN1, _R2 = 1024, 1152, 1280                   # neck+angle, pooled1, pooled2
_RPN, _ROI1, _ROI2, _POOL = 1408, 1440, 1520, 1584  # heads + pool selection matrix
_W_ROWS, _W_LANES = 1600, 256
_B_ROWS = 8


# ----------------------------------------------------------------------------
# The single fused kernel
# ----------------------------------------------------------------------------
def _detector_kernel(a_ref, w_ref, b_ref, out_pix_ref, out_vec_ref, f1_scr,
                     *, n, row0):
    f32, bf16 = jnp.float32, jnp.bfloat16
    r4 = 4 * n

    # Zero the top pad rows of the f1 scratch: they provide the conv zero
    # padding (dh = -1 taps) for stage 2.  Aligned full-width stores.
    zpad = jnp.zeros((row0, 256), f32)
    f1_scr[0, 0:row0, :] = zpad
    f1_scr[1, 0:row0, :] = zpad

    # -------- backbone stage 1: one K-folded, M-stacked GEMM ------------------
    # A_all rows = (parity group, qh, batch), lanes = (qw, tap, cin) padded to 256.
    # Weight columns 0:16 / 80:128 are zero -> output already carries the
    # left/right lane padding needed by stage 2.
    f1 = jnp.dot(a_ref[...], w_ref[_W1:_W1 + 256, 0:128],
                 preferred_element_type=f32)
    f1 = jnp.maximum(f1 + b_ref[0:1, :], 0.0)                     # (16n, 128)

    # Scatter the 4 parity groups into the zero-padded scratch.  Row offset
    # row0 is a multiple of 8 and lane offsets are 0/128 -> unmasked stores.
    f1_scr[0, row0:row0 + r4, 0:128] = f1[0 * r4:1 * r4, :]       # ph=0, pw=0
    f1_scr[0, row0:row0 + r4, 128:256] = f1[1 * r4:2 * r4, :]     # ph=0, pw=1
    f1_scr[1, row0:row0 + r4, 0:128] = f1[2 * r4:3 * r4, :]       # ph=1, pw=0
    f1_scr[1, row0:row0 + r4, 128:256] = f1[3 * r4:4 * r4, :]     # ph=1, pw=1

    # -------- pooled stage-1 features (spatial mean folded into 2 GEMMs) ------
    pool_a = w_ref[_POOL:_POOL + n, 0:16 * n]                     # (n, 16n) 0/1 bf16
    m1 = jnp.dot(pool_a, f1.astype(bf16), preferred_element_type=f32)   # (n, 128)
    # RN1 = stacked-identity lane reduction @ neck1_w, with the 1/64 mean folded in.
    pooled1 = (jnp.dot(m1.astype(bf16), w_ref[_RN1:_RN1 + 128, 0:HIDDEN],
                       preferred_element_type=f32)
               + b_ref[6:7, 0:HIDDEN])                            # (n, 32)

    # -------- backbone stage 2: 3 dw-folded GEMMs (one per kernel row dh) -----
    a_m1 = f1_scr[1, row0 - n:row0 - n + r4, :].astype(bf16)      # dh = -1
    a_z = f1_scr[0, row0:row0 + r4, :].astype(bf16)               # dh =  0
    a_p1 = f1_scr[1, row0:row0 + r4, :].astype(bf16)              # dh = +1
    acc2 = (jnp.dot(a_m1, w_ref[_W2M1:_W2M1 + 256, 0:128], preferred_element_type=f32)
            + jnp.dot(a_z, w_ref[_W20:_W20 + 256, 0:128], preferred_element_type=f32)
            + jnp.dot(a_p1, w_ref[_W2P1:_W2P1 + 256, 0:128], preferred_element_type=f32))
    f2 = jnp.maximum(acc2 + b_ref[1:2, :], 0.0)                   # (4n, 128)

    # -------- neck 1x1 conv + fused rpn angle head: one N=256 GEMM ------------
    big = jnp.dot(f2.astype(bf16), w_ref[_NW:_NW + 128, 0:256],
                  preferred_element_type=f32)                     # (4n, 256)
    n2 = big[:, 0:128] + b_ref[2:3, :]                            # neck features
    out_pix_ref[...] = big[:, 128:256] + b_ref[3:4, :]            # angle slab (lanes 0:4)

    # -------- pooled neck-2 features -------------------------------------------
    m2 = jnp.dot(pool_a[:, 0:r4], n2.astype(bf16),
                 preferred_element_type=f32)                      # (n, 128)
    pooled2 = jnp.dot(m2.astype(bf16), w_ref[_R2:_R2 + 128, 0:HIDDEN],
                      preferred_element_type=f32)                 # (n, 32), 1/16 folded

    # -------- rpn fc (padded to 128 lanes) + roi head --------------------------
    p2_bf = pooled2.astype(bf16)
    prop_slab = (jnp.dot(p2_bf, w_ref[_RPN:_RPN + HIDDEN, 0:128],
                         preferred_element_type=f32)
                 + b_ref[4:5, :])                                 # (n, 128)
    proposals = prop_slab[:, 0:2 * NUM_PRIORS]                    # lanes 0:16

    # roi fc1 via split-K (no in-kernel concat of [pooled1, pooled2, proposals])
    h = (jnp.dot(pooled1.astype(bf16), w_ref[_ROI1:_ROI1 + HIDDEN, 0:64],
                 preferred_element_type=f32)
         + jnp.dot(p2_bf, w_ref[_ROI1 + HIDDEN:_ROI1 + 2 * HIDDEN, 0:64],
                   preferred_element_type=f32)
         + jnp.dot(proposals.astype(bf16),
                   w_ref[_ROI1 + 2 * HIDDEN:_ROI1 + 2 * HIDDEN + 2 * NUM_PRIORS, 0:64],
                   preferred_element_type=f32)
         + b_ref[5:6, 0:64])
    h = jnp.maximum(h, 0.0)                                       # (n, 64)

    # roi fc2 weights are padded to lanes 16:64 of a 128-lane slab; prop_slab
    # already carries the rpn + roi2 biases -> one unmasked 128-lane store.
    out_vec_ref[...] = prop_slab + jnp.dot(h.astype(bf16),
                                           w_ref[_ROI2:_ROI2 + 64, 0:128],
                                           preferred_element_type=f32)


# ----------------------------------------------------------------------------
# Deterministic parameter init (same synthetic architecture / shapes as before)
# ----------------------------------------------------------------------------
def init_params(key):
    def w(k, shape, scale=0.1):
        return scale * jax.random.normal(k, shape, dtype=jnp.float32)

    ks = jax.random.split(key, 16)
    p = {
        # backbone: two 3x3/s2 conv+relu stages (weights in im2col (kh,kw,Cin) layout)
        "bb1_w": w(ks[0], (9 * C_IN, C1)),     "bb1_b": jnp.zeros((C1,), jnp.float32),
        "bb2_w": w(ks[1], (9 * C1, C2)),       "bb2_b": jnp.zeros((C2,), jnp.float32),
        # neck: 1x1 channel mappers -> HIDDEN
        "neck1_w": w(ks[2], (C1, HIDDEN)),     "neck1_b": jnp.zeros((HIDDEN,), jnp.float32),
        "neck2_w": w(ks[3], (C2, HIDDEN)),     "neck2_b": jnp.zeros((HIDDEN,), jnp.float32),
        # rpn head: per-pixel angle map + pooled FC emitting prior start points
        "rpn_angle_w": w(ks[4], (HIDDEN, 1)),  "rpn_angle_b": jnp.zeros((1,), jnp.float32),
        "rpn_fc_w": w(ks[5], (HIDDEN, NUM_PRIORS * 2)),
        "rpn_fc_b": jnp.zeros((NUM_PRIORS * 2,), jnp.float32),
        # roi head: two FC layers -> per-prior cls (2) + reg (4)
        "roi_fc1_w": w(ks[6], (2 * HIDDEN + NUM_PRIORS * 2, 64)),
        "roi_fc1_b": jnp.zeros((64,), jnp.float32),
        "roi_fc2_w": w(ks[7], (64, NUM_PRIORS * 6)),
        "roi_fc2_b": jnp.zeros((NUM_PRIORS * 6,), jnp.float32),
    }
    return p


# ----------------------------------------------------------------------------
# Wrapper-side layout plumbing (runs under the same jit, feeds ONE pallas_call)
# ----------------------------------------------------------------------------
def _build_w2(bb2_w, dh):
    """Stage-2 conv weight for kernel-row dh, with the dw taps folded into K.

    K layout (256 rows) matches the f1 scratch lanes: [pw=0 slab | pw=1 slab],
    each slab = 5 blocks of 16 channels (block 0 = left zero pad) + 48 zero lanes.
    """
    m = jnp.zeros((256, 128), jnp.float32)
    for dw in (-1, 0, 1):
        t = _TAPS.index((dh, dw))
        wt = bb2_w[t * C1:(t + 1) * C1, :]               # (16, 32)
        pw = dw & 1
        joff = 0 if dw < 0 else 1                        # column-quotient block offset
        for ow2 in range(4):
            r = pw * 128 + 16 * (ow2 + joff)
            m = m.at[r:r + C1, C2 * ow2:C2 * ow2 + C2].add(wt)
    return m


def _prepare_inputs(p, x_nchw):
    f32, bf16 = jnp.float32, jnp.bfloat16
    x = jnp.transpose(x_nchw, (0, 2, 3, 1)).astype(f32)          # NCHW -> NHWC
    n, h, w_, c = x.shape
    assert (h, w_, c) == (16, 16, C_IN), "synthetic architecture expects 4x16x16 inputs"
    assert n <= 16

    # ---- activations: stage-1 im2col with taps folded into lanes ------------
    # rows = (parity group pg=2*ph+pw, qh, batch), lanes = (qw, tap, cin) -> 144,
    # zero-padded to 256 lanes so the stage-1 GEMM is a single K=256 pass.
    xp = jnp.pad(x, ((0, 0), (1, 0), (1, 0), (0, 0)))            # (n, 17, 17, 4)
    per_pg = []
    for ph in range(2):
        for pw in range(2):
            taps = []
            for (dh, dw) in _TAPS:
                r0 = 2 * ph + dh + 1
                c0 = 2 * pw + dw + 1
                taps.append(xp[:, r0:r0 + 13:4, c0:c0 + 13:4, :])   # (n, 4, 4, C_IN)
            tp = jnp.stack(taps, axis=3)                            # (n, qh, qw, 9, C_IN)
            per_pg.append(jnp.transpose(tp, (1, 0, 2, 3, 4)).reshape(4 * n, 9 * 4 * C_IN))
    a_all = jnp.concatenate(per_pg, axis=0)                         # (16n, 144)
    a_all = jnp.pad(a_all, ((0, 0), (0, _W_LANES - 144))).astype(bf16)

    # ---- stage-1 weight: K-folded, output columns pre-padded -----------------
    w1k = jnp.zeros((256, 128), f32)
    w1k = w1k.at[0:144, 16:80].set(jnp.kron(jnp.eye(4, dtype=f32), p["bb1_w"]))

    # ---- neck 1x1 + fused angle head (columns 128:132) -----------------------
    nw = jnp.zeros((128, 256), f32)
    nw = nw.at[:, 0:128].set(jnp.kron(jnp.eye(4, dtype=f32), p["neck2_w"]))
    nw = nw.at[:, 128:132].set(jnp.kron(jnp.eye(4, dtype=f32),
                                        p["neck2_w"] @ p["rpn_angle_w"]))

    # ---- pooled-feature reduction matrices (means folded in) -----------------
    r1 = jnp.zeros((128, C1), f32)
    for qw in range(4):
        r1 = r1.at[16 * (qw + 1):16 * (qw + 2), :].set(jnp.eye(C1, dtype=f32))
    rn1 = (r1 @ p["neck1_w"]) * (1.0 / 64.0)                     # (128, 32)

    r2 = jnp.zeros((128, HIDDEN), f32)
    for ow2 in range(4):
        r2 = r2.at[HIDDEN * ow2:HIDDEN * (ow2 + 1), :].set(jnp.eye(HIDDEN, dtype=f32))
    r2 = r2 * (1.0 / 16.0)

    # ---- head weights padded to lane-dense 128-wide outputs ------------------
    rpn_pad = jnp.zeros((HIDDEN, 128), f32).at[:, 0:2 * NUM_PRIORS].set(p["rpn_fc_w"])
    roi2_pad = jnp.zeros((64, 128), f32).at[:, 2 * NUM_PRIORS:8 * NUM_PRIORS].set(p["roi_fc2_w"])

    # ---- batch-selection matrix for the row (spatial) pools -------------------
    pool_a = jnp.tile(jnp.eye(n, dtype=f32), (1, 16))            # (n, 16n), 0/1

    # ---- ONE packed bf16 weight slab ------------------------------------------
    slab = jnp.zeros((_W_ROWS, _W_LANES), f32)

    def put(s, r, m):
        return s.at[r:r + m.shape[0], 0:m.shape[1]].set(m)

    slab = put(slab, _W1, w1k)
    slab = put(slab, _W2M1, _build_w2(p["bb2_w"], -1))
    slab = put(slab, _W20, _build_w2(p["bb2_w"], 0))
    slab = put(slab, _W2P1, _build_w2(p["bb2_w"], 1))
    slab = put(slab, _NW, nw)
    slab = put(slab, _RN1, rn1)
    slab = put(slab, _R2, r2)
    slab = put(slab, _RPN, rpn_pad)
    slab = put(slab, _ROI1, p["roi_fc1_w"])
    slab = put(slab, _ROI2, roi2_pad)
    slab = put(slab, _POOL, pool_a)
    w_slab = slab.astype(bf16)

    # ---- ONE packed f32 bias slab ---------------------------------------------
    b = jnp.zeros((_B_ROWS, 128), f32)
    b = b.at[0, 16:80].set(jnp.tile(p["bb1_b"], 4))                       # stage-1
    b = b.at[1, :].set(jnp.tile(p["bb2_b"], 4))                           # stage-2
    b = b.at[2, :].set(jnp.tile(p["neck2_b"], 4))                         # neck2
    b = b.at[3, 0:4].set(jnp.tile(p["neck2_b"] @ p["rpn_angle_w"]
                                  + p["rpn_angle_b"], 4))                 # fused angle
    b = b.at[4, 0:2 * NUM_PRIORS].set(p["rpn_fc_b"])                      # out_vec slab
    b = b.at[4, 2 * NUM_PRIORS:8 * NUM_PRIORS].set(p["roi_fc2_b"])
    b = b.at[5, 0:64].set(p["roi_fc1_b"])                                 # roi fc1
    b = b.at[6, 0:HIDDEN].set(p["neck1_b"])                               # neck1

    return a_all, w_slab, b


def two_stage_detector_forward(p, x_nchw):
    n = x_nchw.shape[0]
    a_all, w_slab, b_slab = _prepare_inputs(p, x_nchw)
    row0 = ((n + 7) // 8) * 8       # aligned start row of the f1 quotient block

    def _full(shape):
        nd = len(shape)
        return pl.BlockSpec(shape, lambda i, _nd=nd: (0,) * _nd)

    kernel = functools.partial(_detector_kernel, n=n, row0=row0)
    out_pix, out_vec = pl.pallas_call(
        kernel,
        out_shape=(jax.ShapeDtypeStruct((4 * n, 128), jnp.float32),   # per-pixel slab
                   jax.ShapeDtypeStruct((n, 128), jnp.float32)),      # per-image slab
        grid=(1,),
        in_specs=[_full(a_all.shape), _full(w_slab.shape), _full(b_slab.shape)],
        out_specs=[pl.BlockSpec((4 * n, 128), lambda i: (0, 0)),
                   pl.BlockSpec((n, 128), lambda i: (0, 0))],
        scratch_shapes=[pltpu.VMEM((2, row0 + 4 * n, 256), jnp.float32)],
        compiler_params=pltpu.CompilerParams(dimension_semantics=("arbitrary",)),
    )(a_all, w_slab, b_slab)

    # Unpack the lane-dense slabs (pure wrapper-side reshapes).
    angle_map = out_pix[:, :4].reshape(4, n, 4).transpose(1, 0, 2)[..., None]  # (n,4,4,1)
    proposals = out_vec[:, :2 * NUM_PRIORS].reshape(n, NUM_PRIORS, 2)
    roi = out_vec[:, 2 * NUM_PRIORS:8 * NUM_PRIORS].reshape(n, NUM_PRIORS, 6)
    return {
        "angle_map": angle_map,       # (n, 4, 4, 1)
        "proposals": proposals,       # (n, NUM_PRIORS, 2)
        "cls_logits": roi[..., :2],   # (n, NUM_PRIORS, 2)
        "reg": roi[..., 2:],          # (n, NUM_PRIORS, 4)
    }


if __name__ == "__main__":
    key = jax.random.PRNGKey(0)
    x = jax.random.normal(key, (2, 4, 16, 16), dtype=jnp.float32)   # NCHW, like PyTorch
    params = init_params(jax.random.PRNGKey(1))

    out = jax.jit(two_stage_detector_forward)(params, x)
    out = jax.tree_util.tree_map(jax.block_until_ready, out)

    assert out["angle_map"].shape == (2, 4, 4, 1)
    assert out["proposals"].shape == (2, NUM_PRIORS, 2)
    assert out["cls_logits"].shape == (2, NUM_PRIORS, 2)
    assert out["reg"].shape == (2, NUM_PRIORS, 4)
    print("KERNEL_OK")
</pallas_src>

<mosaic_0001>
module attributes {stable_mosaic.version = 11 : i64} {
  func.func @_detector_kernel(%arg0: i32, %arg1: memref<32x256xbf16, #tpu.memory_space<vmem>>, %arg2: memref<1600x256xbf16, #tpu.memory_space<vmem>>, %arg3: memref<8x128xf32, #tpu.memory_space<vmem>>, %arg4: memref<8x128xf32, #tpu.memory_space<vmem>>, %arg5: memref<2x128xf32, #tpu.memory_space<vmem>>, %arg6: memref<2x16x256xf32, #tpu.memory_space<vmem>>) attributes {dimension_semantics = [#tpu.dimension_semantics<arbitrary>], iteration_bounds = array<i64: 1>, scalar_prefetch = 0 : i64, scratch_operands = 1 : i64, tpu.core_type = #tpu.core_type<tc>, window_params = [{pipeline_mode = #tpu.pipeline_mode<synchronous>, transform_indices = @transform_0, window_bounds = array<i64: 32, 256>}, {pipeline_mode = #tpu.pipeline_mode<synchronous>, transform_indices = @transform_1, window_bounds = array<i64: 1600, 256>}, {pipeline_mode = #tpu.pipeline_mode<synchronous>, transform_indices = @transform_2, window_bounds = array<i64: 8, 128>}, {pipeline_mode = #tpu.pipeline_mode<synchronous>, transform_indices = @transform_3, window_bounds = array<i64: 8, 128>}, {pipeline_mode = #tpu.pipeline_mode<synchronous>, transform_indices = @transform_4, window_bounds = array<i64: 2, 128>}]} {
    %cst = arith.constant 0.000000e+00 : f32
    %0 = vector.broadcast %cst : f32 to vector<8x256xf32>
    %c0 = arith.constant 0 : index
    %c0_0 = arith.constant 0 : index
    %c0_1 = arith.constant 0 : index
    %1 = vector.load %arg6[%c0, %c0_0, %c0_1] : memref<2x16x256xf32, #tpu.memory_space<vmem>>, vector<1x8x256xf32>
    %2 = vector.shape_cast %1 : vector<1x8x256xf32> to vector<8x256xf32>
    %3 = vector.shape_cast %0 : vector<8x256xf32> to vector<1x8x256xf32>
    tpu.vector_store %arg6[%c0, %c0_0, %c0_1], %3 {strides = array<i32>} : memref<2x16x256xf32, #tpu.memory_space<vmem>>, vector<1x8x256xf32>,
    %c1 = arith.constant 1 : index
    %c0_2 = arith.constant 0 : index
    %c0_3 = arith.constant 0 : index
    %4 = vector.load %arg6[%c1, %c0_2, %c0_3] : memref<2x16x256xf32, #tpu.memory_space<vmem>>, vector<1x8x256xf32>
    %5 = vector.shape_cast %4 : vector<1x8x256xf32> to vector<8x256xf32>
    %6 = vector.shape_cast %0 : vector<8x256xf32> to vector<1x8x256xf32>
    tpu.vector_store %arg6[%c1, %c0_2, %c0_3], %6 {strides = array<i32>} : memref<2x16x256xf32, #tpu.memory_space<vmem>>, vector<1x8x256xf32>,
    %c0_4 = arith.constant 0 : index
    %c0_5 = arith.constant 0 : index
    %7 = vector.load %arg1[%c0_4, %c0_5] : memref<32x256xbf16, #tpu.memory_space<vmem>>, vector<32x256xbf16>
    %c0_6 = arith.constant 0 : index
    %c0_7 = arith.constant 0 : index
    %8 = vector.load %arg2[%c0_6, %c0_7] : memref<1600x256xbf16, #tpu.memory_space<vmem>>, vector<256x128xbf16>
    %cst_8 = arith.constant dense<0.000000e+00> : vector<32x128xf32>
    %9 = tpu.matmul %7, %8, %cst_8 {dimension_numbers = #tpu.dot_dimension_numbers<[1], [0], [0], [1], [0, 0, 1, 1], [], []>} : vector<32x256xbf16>, vector<256x128xbf16>, vector<32x128xf32> -> vector<32x128xf32>
    %c0_9 = arith.constant 0 : index
    %c0_10 = arith.constant 0 : index
    %10 = vector.load %arg3[%c0_9, %c0_10] : memref<8x128xf32, #tpu.memory_space<vmem>>, vector<1x128xf32>
    %11 = vector.broadcast %10 : vector<1x128xf32> to vector<32x128xf32>
    %12 = arith.addf %9, %11 : vector<32x128xf32>
    %cst_11 = arith.constant 0.000000e+00 : f32
    %13 = vector.broadcast %cst_11 : f32 to vector<32x128xf32>
    %14 = arith.maximumf %12, %13 : vector<32x128xf32>
    %15 = vector.extract_strided_slice %14 {offsets = [0, 0], sizes = [8, 128], strides = [1, 1]} : vector<32x128xf32> to vector<8x128xf32>
    %c0_12 = arith.constant 0 : index
    %c8 = arith.constant 8 : index
    %c0_13 = arith.constant 0 : index
    %16 = vector.load %arg6[%c0_12, %c8, %c0_13] : memref<2x16x256xf32, #tpu.memory_space<vmem>>, vector<1x8x128xf32>
    %17 = vector.shape_cast %16 : vector<1x8x128xf32> to vector<8x128xf32>
    %18 = vector.shape_cast %15 : vector<8x128xf32> to vector<1x8x128xf32>
    tpu.vector_store %arg6[%c0_12, %c8, %c0_13], %18 {strides = array<i32>} : memref<2x16x256xf32, #tpu.memory_space<vmem>>, vector<1x8x128xf32>,
    %19 = vector.extract_strided_slice %14 {offsets = [8, 0], sizes = [8, 128], strides = [1, 1]} : vector<32x128xf32> to vector<8x128xf32>
    %c0_14 = arith.constant 0 : index
    %c8_15 = arith.constant 8 : index
    %c128 = arith.constant 128 : index
    %20 = vector.load %arg6[%c0_14, %c8_15, %c128] : memref<2x16x256xf32, #tpu.memory_space<vmem>>, vector<1x8x128xf32>
    %21 = vector.shape_cast %20 : vector<1x8x128xf32> to vector<8x128xf32>
    %22 = vector.shape_cast %19 : vector<8x128xf32> to vector<1x8x128xf32>
    tpu.vector_store %arg6[%c0_14, %c8_15, %c128], %22 {strides = array<i32>} : memref<2x16x256xf32, #tpu.memory_space<vmem>>, vector<1x8x128xf32>,
    %23 = vector.extract_strided_slice %14 {offsets = [16, 0], sizes = [8, 128], strides = [1, 1]} : vector<32x128xf32> to vector<8x128xf32>
    %c1_16 = arith.constant 1 : index
    %c8_17 = arith.constant 8 : index
    %c0_18 = arith.constant 0 : index
    %24 = vector.load %arg6[%c1_16, %c8_17, %c0_18] : memref<2x16x256xf32, #tpu.memory_space<vmem>>, vector<1x8x128xf32>
    %25 = vector.shape_cast %24 : vector<1x8x128xf32> to vector<8x128xf32>
    %26 = vector.shape_cast %23 : vector<8x128xf32> to vector<1x8x128xf32>
    tpu.vector_store %arg6[%c1_16, %c8_17, %c0_18], %26 {strides = array<i32>} : memref<2x16x256xf32, #tpu.memory_space<vmem>>, vector<1x8x128xf32>,
    %27 = vector.extract_strided_slice %14 {offsets = [24, 0], sizes = [8, 128], strides = [1, 1]} : vector<32x128xf32> to vector<8x128xf32>
    %c1_19 = arith.constant 1 : index
    %c8_20 = arith.constant 8 : index
    %c128_21 = arith.constant 128 : index
    %28 = vector.load %arg6[%c1_19, %c8_20, %c128_21] : memref<2x16x256xf32, #tpu.memory_space<vmem>>, vector<1x8x128xf32>
    %29 = vector.shape_cast %28 : vector<1x8x128xf32> to vector<8x128xf32>
    %30 = vector.shape_cast %27 : vector<8x128xf32> to vector<1x8x128xf32>
    tpu.vector_store %arg6[%c1_19, %c8_20, %c128_21], %30 {strides = array<i32>} : memref<2x16x256xf32, #tpu.memory_space<vmem>>, vector<1x8x128xf32>,
    %c1584 = arith.constant 1584 : index
    %c0_22 = arith.constant 0 : index
    %31 = vector.load %arg2[%c1584, %c0_22] : memref<1600x256xbf16, #tpu.memory_space<vmem>>, vector<2x32xbf16>
    %32 = arith.truncf %14 : vector<32x128xf32> to vector<32x128xbf16>
    %cst_23 = arith.constant dense<0.000000e+00> : vector<2x128xf32>
    %33 = tpu.matmul %31, %32, %cst_23 {dimension_numbers = #tpu.dot_dimension_numbers<[1], [0], [0], [1], [0, 0, 1, 1], [], []>} : vector<2x32xbf16>, vector<32x128xbf16>, vector<2x128xf32> -> vector<2x128xf32>
    %34 = arith.truncf %33 : vector<2x128xf32> to vector<2x128xbf16>
    %c1152 = arith.constant 1152 : index
    %c0_24 = arith.constant 0 : index
    %35 = vector.load %arg2[%c1152, %c0_24] : memref<1600x256xbf16, #tpu.memory_space<vmem>>, vector<128x32xbf16>
    %cst_25 = arith.constant dense<0.000000e+00> : vector<2x32xf32>
    %36 = tpu.matmul %34, %35, %cst_25 {dimension_numbers = #tpu.dot_dimension_numbers<[1], [0], [0], [1], [0, 0, 1, 1], [], []>} : vector<2x128xbf16>, vector<128x32xbf16>, vector<2x32xf32> -> vector<2x32xf32>
    %c6 = arith.constant 6 : index
    %c0_26 = arith.constant 0 : index
    %37 = vector.load %arg3[%c6, %c0_26] : memref<8x128xf32, #tpu.memory_space<vmem>>, vector<1x32xf32>
    %38 = vector.broadcast %37 : vector<1x32xf32> to vector<2x32xf32>
    %39 = arith.addf %36, %38 : vector<2x32xf32>
    %c1_27 = arith.constant 1 : index
    %c6_28 = arith.constant 6 : index
    %c0_29 = arith.constant 0 : index
    %40 = vector.load %arg6[%c1_27, %c6_28, %c0_29] : memref<2x16x256xf32, #tpu.memory_space<vmem>>, vector<1x8x256xf32>
    %41 = vector.shape_cast %40 : vector<1x8x256xf32> to vector<8x256xf32>
    %42 = arith.truncf %41 : vector<8x256xf32> to vector<8x256xbf16>
    %c0_30 = arith.constant 0 : index
    %c8_31 = arith.constant 8 : index
    %c0_32 = arith.constant 0 : index
    %43 = vector.load %arg6[%c0_30, %c8_31, %c0_32] : memref<2x16x256xf32, #tpu.memory_space<vmem>>, vector<1x8x256xf32>
    %44 = vector.shape_cast %43 : vector<1x8x256xf32> to vector<8x256xf32>
    %45 = arith.truncf %44 : vector<8x256xf32> to vector<8x256xbf16>
    %c1_33 = arith.constant 1 : index
    %c8_34 = arith.constant 8 : index
    %c0_35 = arith.constant 0 : index
    %46 = vector.load %arg6[%c1_33, %c8_34, %c0_35] : memref<2x16x256xf32, #tpu.memory_space<vmem>>, vector<1x8x256xf32>
    %47 = vector.shape_cast %46 : vector<1x8x256xf32> to vector<8x256xf32>
    %48 = arith.truncf %47 : vector<8x256xf32> to vector<8x256xbf16>
    %c256 = arith.constant 256 : index
    %c0_36 = arith.constant 0 : index
    %49 = vector.load %arg2[%c256, %c0_36] : memref<1600x256xbf16, #tpu.memory_space<vmem>>, vector<256x128xbf16>
    %cst_37 = arith.constant dense<0.000000e+00> : vector<8x128xf32>
    %50 = tpu.matmul %42, %49, %cst_37 {dimension_numbers = #tpu.dot_dimension_numbers<[1], [0], [0], [1], [0, 0, 1, 1], [], []>} : vector<8x256xbf16>, vector<256x128xbf16>, vector<8x128xf32> -> vector<8x128xf32>
    %c512 = arith.constant 512 : index
    %c0_38 = arith.constant 0 : index
    %51 = vector.load %arg2[%c512, %c0_38] : memref<1600x256xbf16, #tpu.memory_space<vmem>>, vector<256x128xbf16>
    %cst_39 = arith.constant dense<0.000000e+00> : vector<8x128xf32>
    %52 = tpu.matmul %45, %51, %cst_39 {dimension_numbers = #tpu.dot_dimension_numbers<[1], [0], [0], [1], [0, 0, 1, 1], [], []>} : vector<8x256xbf16>, vector<256x128xbf16>, vector<8x128xf32> -> vector<8x128xf32>
    %53 = arith.addf %50, %52 : vector<8x128xf32>
    %c768 = arith.constant 768 : index
    %c0_40 = arith.constant 0 : index
    %54 = vector.load %arg2[%c768, %c0_40] : memref<1600x256xbf16, #tpu.memory_space<vmem>>, vector<256x128xbf16>
    %cst_41 = arith.constant dense<0.000000e+00> : vector<8x128xf32>
    %55 = tpu.matmul %48, %54, %cst_41 {dimension_numbers = #tpu.dot_dimension_numbers<[1], [0], [0], [1], [0, 0, 1, 1], [], []>} : vector<8x256xbf16>, vector<256x128xbf16>, vector<8x128xf32> -> vector<8x128xf32>
    %56 = arith.addf %53, %55 : vector<8x128xf32>
    %c1_42 = arith.constant 1 : index
    %c0_43 = arith.constant 0 : index
    %57 = vector.load %arg3[%c1_42, %c0_43] : memref<8x128xf32, #tpu.memory_space<vmem>>, vector<1x128xf32>
    %58 = vector.broadcast %57 : vector<1x128xf32> to vector<8x128xf32>
    %59 = arith.addf %56, %58 : vector<8x128xf32>
    %cst_44 = arith.constant 0.000000e+00 : f32
    %60 = vector.broadcast %cst_44 : f32 to vector<8x128xf32>
    %61 = arith.maximumf %59, %60 : vector<8x128xf32>
    %62 = arith.truncf %61 : vector<8x128xf32> to vector<8x128xbf16>
    %c1024 = arith.constant 1024 : index
    %c0_45 = arith.constant 0 : index
    %63 = vector.load %arg2[%c1024, %c0_45] : memref<1600x256xbf16, #tpu.memory_space<vmem>>, vector<128x256xbf16>
    %cst_46 = arith.constant dense<0.000000e+00> : vector<8x256xf32>
    %64 = tpu.matmul %62, %63, %cst_46 {dimension_numbers = #tpu.dot_dimension_numbers<[1], [0], [0], [1], [0, 0, 1, 1], [], []>} : vector<8x128xbf16>, vector<128x256xbf16>, vector<8x256xf32> -> vector<8x256xf32>
    %65 = vector.extract_strided_slice %64 {offsets = [0, 0], sizes = [8, 128], strides = [1, 1]} : vector<8x256xf32> to vector<8x128xf32>
    %c2 = arith.constant 2 : index
    %c0_47 = arith.constant 0 : index
    %66 = vector.load %arg3[%c2, %c0_47] : memref<8x128xf32, #tpu.memory_space<vmem>>, vector<1x128xf32>
    %67 = vector.broadcast %66 : vector<1x128xf32> to vector<8x128xf32>
    %68 = arith.addf %65, %67 : vector<8x128xf32>
    %69 = vector.extract_strided_slice %64 {offsets = [0, 128], sizes = [8, 128], strides = [1, 1]} : vector<8x256xf32> to vector<8x128xf32>
    %c3 = arith.constant 3 : index
    %c0_48 = arith.constant 0 : index
    %70 = vector.load %arg3[%c3, %c0_48] : memref<8x128xf32, #tpu.memory_space<vmem>>, vector<1x128xf32>
    %71 = vector.broadcast %70 : vector<1x128xf32> to vector<8x128xf32>
    %72 = arith.addf %69, %71 : vector<8x128xf32>
    %c0_49 = arith.constant 0 : index
    %c0_50 = arith.constant 0 : index
    %73 = vector.load %arg4[%c0_49, %c0_50] : memref<8x128xf32, #tpu.memory_space<vmem>>, vector<8x128xf32>
    tpu.vector_store %arg4[%c0_49, %c0_50], %72 {strides = array<i32>} : memref<8x128xf32, #tpu.memory_space<vmem>>, vector<8x128xf32>,
    %74 = vector.extract_strided_slice %31 {offsets = [0, 0], sizes = [2, 8], strides = [1, 1]} : vector<2x32xbf16> to vector<2x8xbf16>
    %75 = arith.truncf %68 : vector<8x128xf32> to vector<8x128xbf16>
    %cst_51 = arith.constant dense<0.000000e+00> : vector<2x128xf32>
    %76 = tpu.matmul %74, %75, %cst_51 {dimension_numbers = #tpu.dot_dimension_numbers<[1], [0], [0], [1], [0, 0, 1, 1], [], []>} : vector<2x8xbf16>, vector<8x128xbf16>, vector<2x128xf32> -> vector<2x128xf32>
    %77 = arith.truncf %76 : vector<2x128xf32> to vector<2x128xbf16>
    %c1280 = arith.constant 1280 : index
    %c0_52 = arith.constant 0 : index
    %78 = vector.load %arg2[%c1280, %c0_52] : memref<1600x256xbf16, #tpu.memory_space<vmem>>, vector<128x32xbf16>
    %cst_53 = arith.constant dense<0.000000e+00> : vector<2x32xf32>
    %79 = tpu.matmul %77, %78, %cst_53 {dimension_numbers = #tpu.dot_dimension_numbers<[1], [0], [0], [1], [0, 0, 1, 1], [], []>} : vector<2x128xbf16>, vector<128x32xbf16>, vector<2x32xf32> -> vector<2x32xf32>
    %80 = arith.truncf %79 : vector<2x32xf32> to vector<2x32xbf16>
    %c1408 = arith.constant 1408 : index
    %c0_54 = arith.constant 0 : index
    %81 = vector.load %arg2[%c1408, %c0_54] : memref<1600x256xbf16, #tpu.memory_space<vmem>>, vector<32x128xbf16>
    %cst_55 = arith.constant dense<0.000000e+00> : vector<2x128xf32>
    %82 = tpu.matmul %80, %81, %cst_55 {dimension_numbers = #tpu.dot_dimension_numbers<[1], [0], [0], [1], [0, 0, 1, 1], [], []>} : vector<2x32xbf16>, vector<32x128xbf16>, vector<2x128xf32> -> vector<2x128xf32>
    %c4 = arith.constant 4 : index
    %c0_56 = arith.constant 0 : index
    %83 = vector.load %arg3[%c4, %c0_56] : memref<8x128xf32, #tpu.memory_space<vmem>>, vector<1x128xf32>
    %84 = vector.broadcast %83 : vector<1x128xf32> to vector<2x128xf32>
    %85 = arith.addf %82, %84 : vector<2x128xf32>
    %86 = vector.extract_strided_slice %85 {offsets = [0, 0], sizes = [2, 16], strides = [1, 1]} : vector<2x128xf32> to vector<2x16xf32>
    %87 = arith.truncf %39 : vector<2x32xf32> to vector<2x32xbf16>
    %c1440 = arith.constant 1440 : index
    %c0_57 = arith.constant 0 : index
    %88 = vector.load %arg2[%c1440, %c0_57] : memref<1600x256xbf16, #tpu.memory_space<vmem>>, vector<32x64xbf16>
    %cst_58 = arith.constant dense<0.000000e+00> : vector<2x64xf32>
    %89 = tpu.matmul %87, %88, %cst_58 {dimension_numbers = #tpu.dot_dimension_numbers<[1], [0], [0], [1], [0, 0, 1, 1], [], []>} : vector<2x32xbf16>, vector<32x64xbf16>, vector<2x64xf32> -> vector<2x64xf32>
    %c1472 = arith.constant 1472 : index
    %c0_59 = arith.constant 0 : index
    %90 = vector.load %arg2[%c1472, %c0_59] : memref<1600x256xbf16, #tpu.memory_space<vmem>>, vector<32x64xbf16>
    %cst_60 = arith.constant dense<0.000000e+00> : vector<2x64xf32>
    %91 = tpu.matmul %80, %90, %cst_60 {dimension_numbers = #tpu.dot_dimension_numbers<[1], [0], [0], [1], [0, 0, 1, 1], [], []>} : vector<2x32xbf16>, vector<32x64xbf16>, vector<2x64xf32> -> vector<2x64xf32>
    %92 = arith.addf %89, %91 : vector<2x64xf32>
    %93 = arith.truncf %86 : vector<2x16xf32> to vector<2x16xbf16>
    %c1504 = arith.constant 1504 : index
    %c0_61 = arith.constant 0 : index
    %94 = vector.load %arg2[%c1504, %c0_61] : memref<1600x256xbf16, #tpu.memory_space<vmem>>, vector<16x64xbf16>
    %cst_62 = arith.constant dense<0.000000e+00> : vector<2x64xf32>
    %95 = tpu.matmul %93, %94, %cst_62 {dimension_numbers = #tpu.dot_dimension_numbers<[1], [0], [0], [1], [0, 0, 1, 1], [], []>} : vector<2x16xbf16>, vector<16x64xbf16>, vector<2x64xf32> -> vector<2x64xf32>
    %96 = arith.addf %92, %95 : vector<2x64xf32>
    %c5 = arith.constant 5 : index
    %c0_63 = arith.constant 0 : index
    %97 = vector.load %arg3[%c5, %c0_63] : memref<8x128xf32, #tpu.memory_space<vmem>>, vector<1x64xf32>
    %98 = vector.broadcast %97 : vector<1x64xf32> to vector<2x64xf32>
    %99 = arith.addf %96, %98 : vector<2x64xf32>
    %cst_64 = arith.constant 0.000000e+00 : f32
    %100 = vector.broadcast %cst_64 : f32 to vector<2x64xf32>
    %101 = arith.maximumf %99, %100 : vector<2x64xf32>
    %102 = arith.truncf %101 : vector<2x64xf32> to vector<2x64xbf16>
    %c1520 = arith.constant 1520 : index
    %c0_65 = arith.constant 0 : index
    %103 = vector.load %arg2[%c1520, %c0_65] : memref<1600x256xbf16, #tpu.memory_space<vmem>>, vector<64x128xbf16>
    %cst_66 = arith.constant dense<0.000000e+00> : vector<2x128xf32>
    %104 = tpu.matmul %102, %103, %cst_66 {dimension_numbers = #tpu.dot_dimension_numbers<[1], [0], [0], [1], [0, 0, 1, 1], [], []>} : vector<2x64xbf16>, vector<64x128xbf16>, vector<2x128xf32> -> vector<2x128xf32>
    %105 = arith.addf %85, %104 : vector<2x128xf32>
    %c0_67 = arith.constant 0 : index
    %c0_68 = arith.constant 0 : index
    %106 = vector.load %arg5[%c0_67, %c0_68] : memref<2x128xf32, #tpu.memory_space<vmem>>, vector<2x128xf32>
    tpu.vector_store %arg5[%c0_67, %c0_68], %105 {strides = array<i32>} : memref<2x128xf32, #tpu.memory_space<vmem>>, vector<2x128xf32>,
    return
  }
  func.func @transform_0(%arg0: i32) -> (i32, i32) {
    %c0_i32 = arith.constant 0 : i32
    %c0_i32_0 = arith.constant 0 : i32
    %c0_i32_1 = arith.constant 0 : i32
    return %c0_i32, %c0_i32_0 : i32, i32
  }
  func.func @transform_1(%arg0: i32) -> (i32, i32) {
    %c0_i32 = arith.constant 0 : i32
    %c0_i32_0 = arith.constant 0 : i32
    %c0_i32_1 = arith.constant 0 : i32
    return %c0_i32, %c0_i32_0 : i32, i32
  }
  func.func @transform_2(%arg0: i32) -> (i32, i32) {
    %c0_i32 = arith.constant 0 : i32
    %c0_i32_0 = arith.constant 0 : i32
    %c0_i32_1 = arith.constant 0 : i32
    return %c0_i32, %c0_i32_0 : i32, i32
  }
  func.func @transform_3(%arg0: i32) -> (i32, i32) {
    %c0_i32 = arith.constant 0 : i32
    %c0_i32_0 = arith.constant 0 : i32
    %c0_i32_1 = arith.constant 0 : i32
    return %c0_i32, %c0_i32_0 : i32, i32
  }
  func.func @transform_4(%arg0: i32) -> (i32, i32) {
    %c0_i32 = arith.constant 0 : i32
    %c0_i32_0 = arith.constant 0 : i32
    %c0_i32_1 = arith.constant 0 : i32
    return %c0_i32, %c0_i32_0 : i32, i32
  }
}

</mosaic_0001>

<bundles_post_ra>
// kernel: two_stage_detector_forward.1
= control target key start
LH: loop header
LB: loop body
LE: loop exit
PB: predicated region body
PF: predicated region fallthrough
CT: control target
= control target key end

     0   :  { %v2036_v37 = vmov 0.0   ;;  %vm2037_vm0 = vmmov 0   ;;  %vm239_vm1 = vcmask 261120   ;;  %vm1080_vm2 = vcmask 1043456   ;;  %s2491_s1 = inlined_call_operand.vmem [shape: bf16[1600,256], index: 1, kind: input, shape index: {}]   ;;  %s2492_s0 = inlined_call_operand.vmem [shape: bf16[32,256], index: 0, kind: input, shape index: {}]   ;;  %s2493_s2 = inlined_call_operand.vmem [shape: f32[8,128], index: 2, kind: input, shape index: {}]   ;;  %s2494_s3 = inlined_call_operand.vmem [shape: f32[8,128], index: 3, kind: output, shape index: {0}]   ;;  %s2495_s4 = inlined_call_operand.vmem [shape: f32[2,128], index: 4, kind: output, shape index: {1}]  }
   0x1   :  { %v1915_v0 = vld [vmem:[%s2491_s1 + $0x80] ss:$8 sps:$4 sm:$0xff]   ;;  %v1917_v2 = vld [vmem:[%s2491_s1 + $0x90] ss:$8 sps:$4 sm:$0xff]   ;;  %v1933_v11 = vld [vmem:[%s2492_s0 + $0x4] ss:$8 sps:$4 sm:$0xff]   ;;  %1816 = vmatprep.subr.bf16.mxu1 %v2036_v37  ;;  %1820 = vmatprep.mubr.msk.bf16.mxu1 %vm2037_vm0, %v2036_v37 }
   0x2   :  { %v1916_v1 = vld [vmem:[%s2491_s1] ss:$8 sps:$4 sm:$0xff]   ;;  %1683 = vmatprep.subr.bf16.mxu0 %v1915_v0  ;;  %v1918_v3 = vld [vmem:[%s2491_s1 + $0x10] ss:$8 sps:$4 sm:$0xff]   ;;  %211 = vmatprep.mubr.bf16.mxu0 %v1933_v11  ;;  %v1934_v19 = vld [vmem:[%s2492_s0 + $0x14] ss:$8 sps:$4 sm:$0xff]  }
   0x3   :  { %1684 = vmatpush3.bf16.msra.mxu0 %v1916_v1  ;;  %v1919_v4 = vld [vmem:[%s2491_s1 + $0xa0] ss:$8 sps:$4 sm:$0xff]   ;;  %v1921_v6 = vld [vmem:[%s2491_s1 + $0xb0] ss:$8 sps:$4 sm:$0xff]   ;;  %20 = vst [vmem:[#allocation2 + $0x20] sm:$0xff] %v2036_v37  ;;  %21 = vst [vmem:[#allocation2 + $0x28] sm:$0xff] %v2036_v37 }
   0x4   :  { %1685 = vmatprep.subr.bf16.mxu0 %v1917_v2  ;;  %v1920_v5 = vld [vmem:[%s2491_s1 + $0x20] ss:$8 sps:$4 sm:$0xff]   ;;  %v1922_v7 = vld [vmem:[%s2491_s1 + $0x30] ss:$8 sps:$4 sm:$0xff]   ;;  %vm1077_vm3 = vcmask 64512   ;;  %vm1419_vm4 = vcmask 130048  }
   0x5   :  { %v1923_v8 = vld [vmem:[%s2491_s1 + $0xc0] ss:$8 sps:$4 sm:$0xff]   ;;  %v1925_v10 = vld [vmem:[%s2491_s1 + $0xd0] ss:$8 sps:$4 sm:$0xff]   ;;  %vm1504_vm5 = vcmask 523264  }
   0x6   :  { %v1924_v9 = vld [vmem:[%s2491_s1 + $0x40] ss:$8 sps:$4 sm:$0xff]   ;;  %v1926_v12 = vld [vmem:[%s2491_s1 + $0x50] ss:$8 sps:$4 sm:$0xff]  }
   0x7   :  { %1686 = vmatpush3.bf16.msra.mxu0 %v1918_v3  ;;  %v1927_v13 = vld [vmem:[%s2491_s1 + $0xe0] ss:$8 sps:$4 sm:$0xff]   ;;  %v1929_v15 = vld [vmem:[%s2491_s1 + $0xf0] ss:$8 sps:$4 sm:$0xff]  }
   0x8   :  { %1687 = vmatprep.subr.bf16.mxu0 %v1919_v4  ;;  %v1928_v14 = vld [vmem:[%s2491_s1 + $0x60] ss:$8 sps:$4 sm:$0xff]   ;;  %v1930_v16 = vld [vmem:[%s2491_s1 + $0x70] ss:$8 sps:$4 sm:$0xff]  }
   0x9   :  { %v1937_v17 = vld [vmem:[%s2491_s1 + $0x280] ss:$8 sps:$4 sm:$0xff]   ;;  %v1939_v21 = vld [vmem:[%s2491_s1 + $0x290] ss:$8 sps:$4 sm:$0xff]  }
   0xa   :  { %v1931_v18 = vld [vmem:[%s2492_s0] ss:$8 sps:$4 sm:$0xff]   ;;  %v1940_v22 = vld [vmem:[%s2491_s1 + $0x210] ss:$8 sps:$4 sm:$0xff]  }
   0xb   :  { %1688 = vmatpush3.bf16.msra.mxu0 %v1920_v5  ;;  %v1938_v20 = vld [vmem:[%s2491_s1 + $0x200] ss:$8 sps:$4 sm:$0xff]   ;;  %v1936_v24 = vld [vmem:[%s2492_s0 + $0x10] ss:$8 sps:$4 sm:$0xff]  }
   0xc   :  { %1689 = vmatprep.subr.bf16.mxu0 %v1921_v6  ;;  %v1941_v23 = vld [vmem:[%s2491_s1 + $0x2a0] ss:$8 sps:$4 sm:$0xff]   ;;  %v1943_v26 = vld [vmem:[%s2491_s1 + $0x2b0] ss:$8 sps:$4 sm:$0xff]  }
   0xd   :  { %v1942_v25 = vld [vmem:[%s2491_s1 + $0x220] ss:$8 sps:$4 sm:$0xff]   ;;  %v1944_v27 = vld [vmem:[%s2491_s1 + $0x230] ss:$8 sps:$4 sm:$0xff]  }
   0xe   :  { %v1945_v28 = vld [vmem:[%s2491_s1 + $0x2c0] ss:$8 sps:$4 sm:$0xff]   ;;  %v1947_v30 = vld [vmem:[%s2491_s1 + $0x2d0] ss:$8 sps:$4 sm:$0xff]  }
   0xf   :  { %1690 = vmatpush3.bf16.msra.mxu0 %v1922_v7  ;;  %v1946_v29 = vld [vmem:[%s2491_s1 + $0x240] ss:$8 sps:$4 sm:$0xff]   ;;  %v1948_v31 = vld [vmem:[%s2491_s1 + $0x250] ss:$8 sps:$4 sm:$0xff]  }
  0x10   :  { %1691 = vmatprep.subr.bf16.mxu0 %v1923_v8  ;;  %v1949_v32 = vld [vmem:[%s2491_s1 + $0x2e0] ss:$8 sps:$4 sm:$0xff]   ;;  %v1951_v34 = vld [vmem:[%s2491_s1 + $0x2f0] ss:$8 sps:$4 sm:$0xff]  }
  0x11   :  { %v1950_v33 = vld [vmem:[%s2491_s1 + $0x260] ss:$8 sps:$4 sm:$0xff]   ;;  %v1952_v35 = vld [vmem:[%s2491_s1 + $0x270] ss:$8 sps:$4 sm:$0xff]  }
  0x12   :  { %v1953_v36 = vld [vmem:[%s2491_s1 + $0x380] ss:$8 sps:$4 sm:$0xff]   ;;  %v1955_v58 = vld [vmem:[%s2491_s1 + $0x390] ss:$8 sps:$4 sm:$0xff]  }
  0x13   :  { %1692 = vmatpush3.bf16.msra.mxu0 %v1924_v9  ;;  %v1558_v39 = vld [vmem:[%s2493_s2] ss:$0 sm:$0xff]  ;;  %v1956_v63 = vld [vmem:[%s2491_s1 + $0x310] ss:$8 sps:$4 sm:$0xff]  }
  0x14   :  { %1693 = vmatprep.subr.bf16.mxu0 %v1925_v10  ;;  %v1954_v55 = vld [vmem:[%s2491_s1 + $0x300] ss:$8 sps:$4 sm:$0xff]   ;;  %v1959_v5 = vld [vmem:[%s2491_s1 + $0x3b0] ss:$8 sps:$4 sm:$0xff]  }
  0x15   :  { %v1957_v0 = vld [vmem:[%s2491_s1 + $0x3a0] ss:$8 sps:$4 sm:$0xff]   ;;  %v2205_v6 = vld [vmem:[%s2491_s1 + $0x630] sm:$0x1] }
  0x16   :  { %v1958_v4 = vld [vmem:[%s2491_s1 + $0x320] ss:$8 sps:$4 sm:$0xff]   ;;  %v1960_v8 = vld [vmem:[%s2491_s1 + $0x330] ss:$8 sps:$4 sm:$0xff]  }
  0x17   :  { %1694 = vmatpush3.bf16.msra.mxu0 %v1926_v12  ;;  %v1969_v7 = vld [vmem:[%s2491_s1 + $0x480] ss:$8 sps:$4 sm:$0xff]   ;;  %v1970_v10 = vld [vmem:[%s2491_s1 + $0x490] ss:$8 sps:$4 sm:$0xff]  }
  0x18   :  { %1695 = vmatprep.subr.bf16.mxu0 %v1927_v13  ;;  %v1961_v9 = vld [vmem:[%s2491_s1 + $0x3c0] ss:$8 sps:$4 sm:$0xff]   ;;  %v1963_v12 = vld [vmem:[%s2491_s1 + $0x3d0] ss:$8 sps:$4 sm:$0xff]  }
  0x19   :  { %v1962_v11 = vld [vmem:[%s2491_s1 + $0x340] ss:$8 sps:$4 sm:$0xff]  }
  0x1a   :  { %v1971_v13 = vld [vmem:[%s2491_s1 + $0x4a0] ss:$8 sps:$4 sm:$0xff]  }
  0x1b   :  { %1696 = vmatpush3.bf16.msra.mxu0 %v1928_v14  ;;  %v1964_v14 = vld [vmem:[%s2491_s1 + $0x350] ss:$8 sps:$4 sm:$0xff]  }
  0x1c   :  { %1697 = vmatprep.subr.bf16.mxu0 %v1929_v15  ;;  %v1965_v15 = vld [vmem:[%s2491_s1 + $0x3e0] ss:$8 sps:$4 sm:$0xff]  }
  0x1f   :  { %1698 = vmatpush3.bf16.msra.mxu0 %v1930_v16  ;;  %v1972_v16 = vld [vmem:[%s2491_s1 + $0x4b0] ss:$8 sps:$4 sm:$0xff]  }
  0x20   :  { %1723 = vmatprep.subr.bf16.mxu0 %v1937_v17  ;;  %v1966_v17 = vld [vmem:[%s2491_s1 + $0x360] ss:$8 sps:$4 sm:$0xff]  }
  0x22   :  { %212 = vmatmul.mubr.bf16.vlgmr.msra.gmra.mrb[0].mxu0 %v1931_v18  ;;  %v1967_v18 = vld [vmem:[%s2491_s1 + $0x3f0] ss:$8 sps:$4 sm:$0xff]  }
  0x23   :  { %219 = vmatprep.mubr.bf16.mxu0 %v1934_v19  ;;  %1724 = vmatpush3.bf16.msra.mxu0 %v1938_v20  ;;  %v1973_v19 = vld [vmem:[%s2491_s1 + $0x4c0] ss:$8 sps:$4 sm:$0xff]   ;;  %v1968_v20 = vld [vmem:[%s2491_s1 + $0x370] ss:$8 sps:$4 sm:$0xff]  }
  0x24   :  { %1725 = vmatprep.subr.bf16.mxu0 %v1939_v21  ;;  %v1974_v21 = vld [vmem:[%s2491_s1 + $0x4d0] ss:$8 sps:$4 sm:$0xff]  }
  0x27   :  { %1726 = vmatpush3.bf16.msra.mxu0 %v1940_v22 }
  0x28   :  { %1727 = vmatprep.subr.bf16.mxu0 %v1941_v23  ;;  %v1975_v23 = vld [vmem:[%s2491_s1 + $0x4e0] ss:$8 sps:$4 sm:$0xff]  }
  0x2a   :  { %220 = vmatmul.mubr.bf16.gmra.mrb[4].mxu0 %v1936_v24  ;;  %v1976_v24 = vld [vmem:[%s2491_s1 + $0x4f0] ss:$8 sps:$4 sm:$0xff]  }
  0x2b   :  { %1728 = vmatpush3.bf16.msra.mxu0 %v1942_v25  ;;  %v1977_v25 = vld [vmem:[%s2491_s1 + $0x180] ss:$8 sps:$4 sm:$0xff]  }
  0x2c   :  { %1729 = vmatprep.subr.bf16.mxu0 %v1943_v26 }
  0x2f   :  { %1730 = vmatpush3.bf16.msra.mxu0 %v1944_v27 }
  0x30   :  { %1731 = vmatprep.subr.bf16.mxu0 %v1945_v28 }
  0x33   :  { %1732 = vmatpush3.bf16.msra.mxu0 %v1946_v29 }
  0x34   :  { %1733 = vmatprep.subr.bf16.mxu0 %v1947_v30 }
  0x37   :  { %1734 = vmatpush3.bf16.msra.mxu0 %v1948_v31  ;;  %v394_v31 = vld [vmem:[#allocation2 + $0x28] sm:$0xc0] }
  0x38   :  { %1735 = vmatprep.subr.bf16.mxu0 %v1949_v32 }
  0x3b   :  { %1736 = vmatpush3.bf16.msra.mxu0 %v1950_v33 }
  0x3c   :  { %1737 = vmatprep.subr.bf16.mxu0 %v1951_v34 }
  0x3f   :  { %1738 = vmatpush3.bf16.msra.mxu0 %v1952_v35  ;;  %v1978_v35 = vld [vmem:[%s2491_s1 + $0x100] ss:$8 sps:$4 sm:$0xff]  }
  0x40   :  { %1767 = vmatprep.subr.bf16.mxu0 %v1953_v36 }
  0xf5   :  { %v1699_v38 = vpop.f32.mrb[0].mxu0 }
  0xf6   :  { %v1700_v40 = vpop.f32.mrb[1].mxu0 }
  0xf7   :  { %v1701_v41 = vadd.f32 %v1700_v40, %v1699_v38  ;;  %v1702_v42 = vpop.f32.mrb[2].mxu0 }
  0xf8   :  { %v1703_v43 = vpop.f32.mrb[3].mxu0 }
  0xf9   :  { %v214_v44 = vadd.f32 %v1701_v41, %v1558_v39  ;;  %v1704_v45 = vadd.f32 %v1703_v43, %v1702_v42  ;;  %v1980_v43 = vld [vmem:[%s2491_s1 + $0x110] ss:$8 sps:$4 sm:$0xff]  }
  0xfb   :  { %v228_v46 = vmax.f32 %v214_v44, 0.0  ;;  %v217_v47 = vadd.f32 %v1704_v45, %v1558_v39  ;;  %v1981_v44 = vld [vmem:[%s2491_s1 + $0x1a0] ss:$8 sps:$4 sm:$0xff]  }
  0xfc   :  { %v1982_v45 = vld [vmem:[%s2491_s1 + $0x120] ss:$8 sps:$4 sm:$0xff]  }
  0xfd   :  { %v229_v48 = vmax.f32 %v217_v47, 0.0  ;;  %v1705_v49 = vpop.f32.mrb[4].mxu0  ;;  %v401_v57 = vpack.c.bf16 %v228_v46, %v228_v46  ;;  %v1984_v47 = vld [vmem:[%s2491_s1 + $0x130] ss:$8 sps:$4 sm:$0xff]  }
  0xfe   :  { %v1706_v50 = vpop.f32.mrb[5].mxu0 }
  0xff   :  { %v1707_v51 = vadd.f32 %v1706_v50, %v1705_v49  ;;  %v1708_v52 = vpop.f32.mrb[6].mxu0  ;;  %v237_v53 = vpack.c.bf16 %v229_v48, %v228_v46  ;;  %v402_v54 = vpack.c.bf16 %v229_v48, %v229_v48  ;;  %v1983_v46 = vld [vmem:[%s2491_s1 + $0x1b0] ss:$8 sps:$4 sm:$0xff]   ;;  %v1985_v48 = vld [vmem:[%s2491_s1 + $0x1c0] ss:$8 sps:$4 sm:$0xff]  }
 0x100   :  { %v1709_v56 = vpop.f32.mrb[7].mxu0  ;;  %v1986_v49 = vld [vmem:[%s2491_s1 + $0x140] ss:$8 sps:$4 sm:$0xff]   ;;  %v1987_v50 = vld [vmem:[%s2491_s1 + $0x1d0] ss:$8 sps:$4 sm:$0xff]  }
 0x101   :  { %v222_v59 = vadd.f32 %v1707_v51, %v1558_v39  ;;  %v1710_v60 = vadd.f32 %v1709_v56, %v1708_v52  ;;  %1817 = vmatpush3.bf16.msra.mxu1 %v237_v53  ;;  %599 = vmatprep.mubr.bf16.mxu0 %v402_v54  ;;  %v1988_v51 = vld [vmem:[%s2491_s1 + $0x150] ss:$8 sps:$4 sm:$0xff]   ;;  %v1989_v52 = vld [vmem:[%s2491_s1 + $0x1e0] ss:$8 sps:$4 sm:$0xff]  }
 0x102   :  { %1818 = vmatprep.subr.bf16.mxu1 %v2036_v37  ;;  %600 = vmatmul.mubr.bf16.vlgmr.msra.gmra.mrb[8].mxu0 %v401_v57 }
 0x103   :  { %v230_v61 = vmax.f32 %v222_v59, 0.0  ;;  %v225_v62 = vadd.f32 %v1710_v60, %v1558_v39  ;;  %1768 = vmatpush3.bf16.msra.mxu0 %v1954_v55  ;;  %v1979_v39 = vld [vmem:[%s2491_s1 + $0x190] ss:$8 sps:$4 sm:$0xff]   ;;  %v1990_v55 = vld [vmem:[%s2491_s1 + $0x160] ss:$8 sps:$4 sm:$0xff]  }
 0x104   :  { %1769 = vmatprep.subr.bf16.mxu0 %v1955_v58  ;;  %v1991_v58 = vld [vmem:[%s2491_s1 + $0x1f0] ss:$8 sps:$4 sm:$0xff]   ;;  %v393_v60 = vld [vmem:[#allocation2 + $0x20] sm:$0xc0] }
 0x105   :  { %234 = vst [vmem:[#allocation2 + $0x30] sm:$0xff] %v230_v61  ;;  %v231_v1 = vmax.f32 %v225_v62, 0.0  ;;  %v405_v22 = vpack.c.bf16 %v230_v61, %v230_v61  ;;  %v1992_v62 = vld [vmem:[%s2491_s1 + $0x170] ss:$8 sps:$4 sm:$0xff]  }
 0x107   :  { %235 = vst [vmem:[#allocation2 + $0x38] sm:$0xff] %v231_v1  ;;  %v238_v2 = vpack.c.bf16 %v231_v1, %v230_v61  ;;  %1770 = vmatpush3.bf16.msra.mxu0 %v1956_v63  ;;  %v406_v3 = vpack.c.bf16 %v231_v1, %v231_v1  ;;  %v1993_v1 = vld [vmem:[%s2491_s1 + $0x400] ss:$8 sps:$4 sm:$0xff]  }
 0x108   :  { %1771 = vmatprep.subr.bf16.mxu0 %v1957_v0 }
 0x109   :  { %1819 = vmatpush3.bf16.msra.mxu1 %v238_v2  ;;  %909 = vmatprep.mubr.bf16.mxu0 %v406_v3  ;;  %v1995_v2 = vld [vmem:[%s2491_s1 + $0x404] ss:$8 sps:$4 sm:$0xff]   ;;  %v1998_v3 = vld [vmem:[%s2491_s1 + $0x414] ss:$8 sps:$4 sm:$0xff]  }
 0x10a   :  { %1824 = vmatprep.subr.bf16.mxu1 %v2036_v37 }
 0x10b   :  { %1772 = vmatpush3.bf16.msra.mxu0 %v1958_v4  ;;  %v1996_v4 = vld [vmem:[%s2491_s1 + $0x410] ss:$8 sps:$4 sm:$0xff]  }
 0x10c   :  { %1821 = vmatmul.mubr.msk.bf16.vlgmr.msra.gmra.mrb[0].mxu1 %vm239_vm1, %v2205_v6  ;;  %1773 = vmatprep.subr.bf16.mxu0 %v1959_v5  ;;  %v395_v61 = vld [vmem:[#allocation2 + $0x30] sm:$0x3f]  ;;  %v2001_v5 = vld [vmem:[%s2491_s1 + $0x424] ss:$8 sps:$4 sm:$0xff]  }
 0x10d   :  { %1825 = vmatpush3.bf16.msra.mxu1 %v1969_v7  ;;  %1840 = vmatprep.mubr.msk.bf16.mxu1 %vm2037_vm0, %v2036_v37  ;;  %v397_v63 = vpack.c.bf16 %v395_v61, %v393_v60  ;;  %v1999_v7 = vld [vmem:[%s2491_s1 + $0x420] ss:$8 sps:$4 sm:$0xff]  }
 0x10e   :  { %1826 = vmatprep.subr.bf16.mxu1 %v2036_v37  ;;  %v396_v32 = vld [vmem:[#allocation2 + $0x38] sm:$0x3f]  ;;  %v2027_v60 = vld [vmem:[%s2491_s1 + $0x5c0] ss:$8 sps:$4 sm:$0xff]  }
 0x10f   :  { %1774 = vmatpush3.bf16.msra.mxu0 %v1960_v8  ;;  %v398_v33 = vpack.c.bf16 %v396_v32, %v394_v31  ;;  %v609_v0 = vrot.slane %v397_v63, 3  ;;  %v2004_v8 = vld [vmem:[%s2491_s1 + $0x434] ss:$8 sps:$4 sm:$0xff]  }
 0x110   :  { %1775 = vmatprep.subr.bf16.mxu0 %v1961_v9  ;;  %v2002_v9 = vld [vmem:[%s2491_s1 + $0x430] ss:$8 sps:$4 sm:$0xff]  }
 0x111   :  { %1827 = vmatpush3.bf16.msra.mxu1 %v1970_v10  ;;  %v610_v41 = vrot.slane %v398_v33, 3  ;;  %v2007_v10 = vld [vmem:[%s2491_s1 + $0x444] ss:$8 sps:$4 sm:$0xff]  }
 0x112   :  { %1828 = vmatprep.subr.bf16.mxu1 %v2036_v37 }
 0x113   :  { %1776 = vmatpush3.bf16.msra.mxu0 %v1962_v11  ;;  %v2005_v11 = vld [vmem:[%s2491_s1 + $0x440] ss:$8 sps:$4 sm:$0xff]  }
 0x114   :  { %1777 = vmatprep.subr.bf16.mxu0 %v1963_v12  ;;  %v2010_v12 = vld [vmem:[%s2491_s1 + $0x454] ss:$8 sps:$4 sm:$0xff]  }
 0x115   :  { %1829 = vmatpush3.bf16.msra.mxu1 %v1971_v13  ;;  %v2008_v13 = vld [vmem:[%s2491_s1 + $0x450] ss:$8 sps:$4 sm:$0xff]  }
 0x116   :  { %1830 = vmatprep.subr.bf16.mxu1 %v2036_v37 }
 0x117   :  { %1778 = vmatpush3.bf16.msra.mxu0 %v1964_v14  ;;  %v2013_v14 = vld [vmem:[%s2491_s1 + $0x464] ss:$8 sps:$4 sm:$0xff]  }
 0x118   :  { %1779 = vmatprep.subr.bf16.mxu0 %v1965_v15  ;;  %v2011_v15 = vld [vmem:[%s2491_s1 + $0x460] ss:$8 sps:$4 sm:$0xff]  }
 0x119   :  { %1831 = vmatpush3.bf16.msra.mxu1 %v1972_v16  ;;  %v2016_v16 = vld [vmem:[%s2491_s1 + $0x474] ss:$8 sps:$4 sm:$0xff]  }
 0x11a   :  { %1832 = vmatprep.subr.bf16.mxu1 %v2036_v37 }
 0x11b   :  { %1780 = vmatpush3.bf16.msra.mxu0 %v1966_v17  ;;  %v2014_v17 = vld [vmem:[%s2491_s1 + $0x470] ss:$8 sps:$4 sm:$0xff]  }
 0x11c   :  { %1781 = vmatprep.subr.bf16.mxu0 %v1967_v18  ;;  %v2038_v18 = vmov 0  }
 0x11d   :  { %1833 = vmatpush3.bf16.msra.mxu1 %v1973_v19 }
 0x11e   :  { %1834 = vmatprep.subr.bf16.mxu1 %v2036_v37 }
 0x11f   :  { %1782 = vmatpush3.bf16.msra.mxu0 %v1968_v20 }
 0x120   :  { %1850 = vmatprep.subr.bf16.mxu0 %v2036_v37 }
 0x121   :  { %1835 = vmatpush3.bf16.msra.mxu1 %v1974_v21 }
 0x122   :  { %910 = vmatmul.mubr.bf16.vlgmr.msra.gmra.mrb[12].mxu0 %v405_v22  ;;  %1836 = vmatprep.subr.bf16.mxu1 %v2036_v37 }
 0x123   :  { %1866 = vmatprep.mubr.msk.bf16.mxu0 %vm2037_vm0, %v2036_v37 }
 0x125   :  { %1837 = vmatpush3.bf16.msra.mxu1 %v1975_v23 }
 0x126   :  { %1838 = vmatprep.subr.bf16.mxu1 %v2036_v37 }
 0x129   :  { %1839 = vmatpush3.bf16.msra.mxu1 %v1976_v24 }
 0x12a   :  { %1745 = vmatprep.subr.bf16.mxu1 %v1977_v25 }
 0x1d5   :  { %v1739_v26 = vpop.f32.mrb[8].mxu0 }
 0x1d6   :  { %v1740_v27 = vpop.f32.mrb[9].mxu0 }
 0x1d7   :  { %v2276_v28 = vadd.f32 %v1740_v27, %v1739_v26  ;;  %v1742_v29 = vpop.f32.mrb[10].mxu0 }
 0x1d8   :  { %v1743_v30 = vpop.f32.mrb[11].mxu0 }
 0x1d9   :  { %v1637_v30 = vld [vmem:[%s2493_s2 + $0x1] ss:$0 sm:$0xff] }
 0x1df   :  { %v277_v34 = vpop.f32.mrb[0].mxu1 }
 0x1e0   :  { %v283_v36 = vpack.c.bf16 %v277_v34, %v277_v34  ;;  %v1822_v38 = vpop.f32.mrb[1].mxu1 }
 0x1e1   :  { %v280_v40 = vpop.f32.mrb[2].mxu1  ;;  %v2020_v38 = vld [vmem:[%s2491_s1 + $0x530] ss:$8 sps:$4 sm:$0xff]  }
 0x1e2   :  { %v1823_v42 = vpop.f32.mrb[3].mxu1  ;;  %1841 = vmatmul.mubr.bf16.vlgmr.msra.gmra.mrb[4].mxu1 %v283_v36  ;;  %v2019_v36 = vld [vmem:[%s2491_s1 + $0x520] ss:$8 sps:$4 sm:$0xff]   ;;  %v2022_v40 = vld [vmem:[%s2491_s1 + $0x550] ss:$8 sps:$4 sm:$0xff]  }
 0x1e3   :  { %1746 = vmatpush3.bf16.msra.mxu1 %v1978_v35  ;;  %741 = vmatprep.mubr.bf16.mxu1 %v610_v41  ;;  %v2017_v35 = vld [vmem:[%s2491_s1 + $0x500] ss:$8 sps:$4 sm:$0xff]  }
 0x1e4   :  { %1747 = vmatprep.subr.bf16.mxu1 %v1979_v39  ;;  %1851 = vmatpush3.bf16.msra.mxu0 %v2017_v35  ;;  %v2021_v39 = vld [vmem:[%s2491_s1 + $0x540] ss:$8 sps:$4 sm:$0xff]  }
 0x1e5   :  { %1852 = vmatprep.subr.bf16.mxu0 %v2036_v37  ;;  %v2023_v41 = vld [vmem:[%s2491_s1 + $0x560] ss:$8 sps:$4 sm:$0xff]  }
 0x1e6   :  { %v1654_v42 = vld [vmem:[%s2493_s2 + $0x2] ss:$0 sm:$0xff] }
 0x1e7   :  { %1748 = vmatpush3.bf16.msra.mxu1 %v1980_v43  ;;  %v1655_v43 = vld [vmem:[%s2493_s2 + $0x3] ss:$0 sm:$0xff] }
 0x1e8   :  { %1749 = vmatprep.subr.bf16.mxu1 %v1981_v44 }
 0x1eb   :  { %1750 = vmatpush3.bf16.msra.mxu1 %v1982_v45 }
 0x1ec   :  { %1751 = vmatprep.subr.bf16.mxu1 %v1983_v46 }
 0x1ef   :  { %1752 = vmatpush3.bf16.msra.mxu1 %v1984_v47 }
 0x1f0   :  { %1753 = vmatprep.subr.bf16.mxu1 %v1985_v48 }
 0x1f3   :  { %1754 = vmatpush3.bf16.msra.mxu1 %v1986_v49 }
 0x1f4   :  { %1755 = vmatprep.subr.bf16.mxu1 %v1987_v50 }
 0x1f5   :  { %v1783_v53 = vpop.f32.mrb[12].mxu0 }
 0x1f6   :  { %v1784_v54 = vpop.f32.mrb[13].mxu0 }
 0x1f7   :  { %1756 = vmatpush3.bf16.msra.mxu1 %v1988_v51  ;;  %v1785_v56 = vadd.f32 %v1784_v54, %v1783_v53  ;;  %v1786_v57 = vpop.f32.mrb[14].mxu0  ;;  %v2025_v53 = vld [vmem:[%s2491_s1 + $0x580] ss:$8 sps:$4 sm:$0xff]  }
 0x1f8   :  { %1757 = vmatprep.subr.bf16.mxu1 %v1989_v52  ;;  %v1787_v59 = vpop.f32.mrb[15].mxu0  ;;  %v2024_v52 = vld [vmem:[%s2491_s1 + $0x570] ss:$8 sps:$4 sm:$0xff]  }
 0x1fb   :  { %1758 = vmatpush3.bf16.msra.mxu1 %v1990_v55 }
 0x1fc   :  { %1759 = vmatprep.subr.bf16.mxu1 %v1991_v58  ;;  %v2026_v58 = vld [vmem:[%s2491_s1 + $0x590] ss:$8 sps:$4 sm:$0xff]  }
 0x1ff   :  { %1760 = vmatpush3.bf16.msra.mxu1 %v1992_v62 }
 0x200   :  { %1022 = vmatprep.subr.bf16.mxu1 %v1995_v2  ;;  %v2029_v2 = vld [vmem:[%s2491_s1 + $0x5a0] ss:$8 sps:$4 sm:$0xff]  }
 0x202   :  { %742 = vmatmul.mubr.bf16.vlgmr.msra.gmra.mrb[8].mxu1 %v609_v0 }
 0x203   :  { %1023 = vmatpush1.bf16.msra.mxu1 %v1993_v1  ;;  %1054 = vmatprep.mubr.bf16.mxu1 %v2038_v18  ;;  %v2028_v1 = vld [vmem:[%s2491_s1 + $0x5d0] ss:$8 sps:$4 sm:$0xff]  }
 0x204   :  { %1024 = vmatprep.subr.bf16.mxu1 %v1998_v3  ;;  %v1580_v3 = vld [vmem:[%s2493_s2 + $0x6] ss:$0 sm:$0xff] }
 0x207   :  { %1025 = vmatpush1.bf16.msra.mxu1 %v1996_v4  ;;  %v2030_v4 = vld [vmem:[%s2491_s1 + $0x5b0] ss:$8 sps:$4 sm:$0xff]  }
 0x208   :  { %1026 = vmatprep.subr.bf16.mxu1 %v2001_v5 }
 0x20b   :  { %1027 = vmatpush1.bf16.msra.mxu1 %v1999_v7 }
 0x20c   :  { %1028 = vmatprep.subr.bf16.mxu1 %v2004_v8  ;;  %v2031_v8 = vld [vmem:[%s2491_s1 + $0x5e0] ss:$8 sps:$4 sm:$0xff]  }
 0x20f   :  { %1029 = vmatpush1.bf16.msra.mxu1 %v2002_v9  ;;  %v2032_v9 = vld [vmem:[%s2491_s1 + $0x5f0] ss:$8 sps:$4 sm:$0xff]  }
 0x210   :  { %1030 = vmatprep.subr.bf16.mxu1 %v2007_v10  ;;  %v2033_v10 = vld [vmem:[%s2491_s1 + $0x600] ss:$8 sps:$4 sm:$0xff]  }
 0x213   :  { %1031 = vmatpush1.bf16.msra.mxu1 %v2005_v11  ;;  %v1665_v11 = vld [vmem:[%s2493_s2 + $0x4] ss:$0 sm:$0xff] }
 0x214   :  { %1032 = vmatprep.subr.bf16.mxu1 %v2010_v12 }
 0x217   :  { %1033 = vmatpush1.bf16.msra.mxu1 %v2008_v13 }
 0x218   :  { %1034 = vmatprep.subr.bf16.mxu1 %v2013_v14 }
 0x21b   :  { %1035 = vmatpush1.bf16.msra.mxu1 %v2011_v15 }
 0x21c   :  { %1036 = vmatprep.subr.bf16.mxu1 %v2016_v16 }
 0x21f   :  { %1037 = vmatpush1.bf16.msra.mxu1 %v2014_v17 }
 0x220   :  { %1844 = vmatprep.subr.bf16.mxu1 %v2036_v37 }
 0x2b5   :  { %v2372_v19 = vpop.f32.mrb[4].mxu1 }
 0x2b6   :  { %v1842_v20 = vpop.f32.mrb[5].mxu1  ;;  %v388_v5 = vadd.f32 %v1580_v3, %v2372_v19 }
 0x2b7   :  { %v390_v21 = vpop.f32.mrb[6].mxu1 }
 0x2b8   :  { %v1843_v22 = vpop.f32.mrb[7].mxu1  ;;  %v1294_v7 = vpack.c.bf16 %v388_v5, %v388_v5 }
 0x2d5   :  { %v1761_v23 = vpop.f32.mrb[8].mxu1 }
 0x2d6   :  { %v1762_v24 = vpop.f32.mrb[9].mxu1 }
 0x2d7   :  { %v1763_v25 = vadd.f32 %v1762_v24, %v1761_v23  ;;  %v1764_v26 = vpop.f32.mrb[10].mxu1 }
 0x2d8   :  { %v1765_v27 = vpop.f32.mrb[11].mxu1 }
 0x2d9   :  { %v744_v29 = vadd.f32 %v1763_v25, %v2276_v28  ;;  %v2018_v28 = vld [vmem:[%s2491_s1 + $0x510] ss:$8 sps:$4 sm:$0xff]  }
 0x2da   :  { %1853 = vmatpush3.bf16.msra.mxu0 %v2018_v28  ;;  %v2034_v27 = vld [vmem:[%s2491_s1 + $0x610] ss:$8 sps:$4 sm:$0xff]  }
 0x2db   :  { %v917_v31 = vadd.f32 %v1785_v56, %v744_v29  ;;  %1854 = vmatprep.subr.bf16.mxu0 %v2036_v37  ;;  %v2035_v29 = vld [vmem:[%s2491_s1 + $0x620] ss:$8 sps:$4 sm:$0xff]  }
 0x2dd   :  { %v923_v32 = vadd.f32 %v1637_v30, %v917_v31  ;;  %v1677_v31 = vld [vmem:[%s2493_s2 + $0x5] ss:$0 sm:$0xff] }
 0x2de   :  { %1855 = vmatpush3.bf16.msra.mxu0 %v2019_v36 }
 0x2df   :  { %v924_v33 = vmax.f32 %v923_v32, 0.0  ;;  %1856 = vmatprep.subr.bf16.mxu0 %v2036_v37 }
 0x2e1   :  { %v925_v34 = vpack.c.bf16 %v924_v33, %v924_v33 }
 0x2e2   :  { %1857 = vmatpush3.bf16.msra.mxu0 %v2020_v38 }
 0x2e3   :  { %1055 = vmatmul.mubr.bf16.vlgmr.msra.gmra.mrb[12].mxu1 %v925_v34  ;;  %1858 = vmatprep.subr.bf16.mxu0 %v2036_v37 }
 0x2e4   :  { %1846 = vmatprep.mubr.msk.bf16.mxu1 %vm2037_vm0, %v2036_v37 }
 0x2e6   :  { %1859 = vmatpush3.bf16.msra.mxu0 %v2021_v39 }
 0x2e7   :  { %1860 = vmatprep.subr.bf16.mxu0 %v2036_v37 }
 0x2ea   :  { %1861 = vmatpush3.bf16.msra.mxu0 %v2022_v40 }
 0x2eb   :  { %1862 = vmatprep.subr.bf16.mxu0 %v2036_v37 }
 0x2ee   :  { %1863 = vmatpush3.bf16.msra.mxu0 %v2023_v41 }
 0x2ef   :  { %1864 = vmatprep.subr.bf16.mxu0 %v2036_v37 }
 0x2f2   :  { %1865 = vmatpush3.bf16.msra.mxu0 %v2024_v52 }
 0x2f3   :  { %1900 = vmatprep.subr.bf16.mxu0 %v2036_v37 }
 0x3b6   :  { %v1056_v44 = vpop.f32.mrb[12].mxu1 }
 0x3b7   :  { %v1068_v45 = vadd.f32 %v1654_v42, %v1056_v44  ;;  %v1058_v46 = vpop.f32.mrb[13].mxu1 }
 0x3b8   :  { %v1074_v47 = vadd.f32 %v1655_v43, %v1058_v46  ;;  %v1060_v48 = vpop.f32.mrb[14].mxu1 }
 0x3b9   :  { %v1076_v49 = vpack.c.bf16 %v1068_v45, %v1068_v45  ;;  %v1061_v50 = vpop.f32.mrb[15].mxu1 }
 0x3ba   :  { %1075 = vst [vmem:[%s2494_s3] sm:$0xff] %v1074_v47 }
 0x3bb   :  { %v1082_v51 = vsel %vm1080_vm2, %v1076_v49, 0 }
 0x3bc   :  { %1845 = vmatpush3.bf16.msra.mxu1 %v1082_v51 }
 0x3bd   :  { %1870 = vmatprep.subr.bf16.mxu1 %v2036_v37 }
 0x3bf   :  { %1847 = vmatmul.mubr.msk.bf16.vlgmr.msra.gmra.mrb[16].mxu1 %vm1077_vm3, %v2205_v6 }
 0x3c0   :  { %1874 = vmatprep.mubr.msk.bf16.mxu1 %vm2037_vm0, %v2036_v37  ;;  %1871 = vmatpush3.bf16.msra.mxu1 %v2025_v53 }
 0x3c1   :  { %1872 = vmatprep.subr.bf16.mxu1 %v2036_v37 }
 0x3c4   :  { %1873 = vmatpush3.bf16.msra.mxu1 %v2026_v58 }
 0x3c5   :  { %1878 = vmatprep.subr.bf16.mxu1 %v2036_v37 }
 0x492   :  { %v1118_v54 = vpop.f32.mrb[16].mxu1 }
 0x493   :  { %v1124_v55 = vpack.c.bf16 %v1118_v54, %v1118_v54  ;;  %v1848_v6 = vpop.f32.mrb[17].mxu1 }
 0x494   :  { %v1121_v56 = vpop.f32.mrb[18].mxu1 }
 0x495   :  { %1867 = vmatmul.mubr.bf16.vlgmr.msra.gmra.mrb[16].mxu0 %v1124_v55  ;;  %v1849_v57 = vpop.f32.mrb[19].mxu1 }
 0x496   :  { %1908 = vmatprep.mubr.msk.bf16.mxu0 %vm2037_vm0, %v2036_v37  ;;  %1901 = vmatpush3.bf16.msra.mxu0 %v2032_v9 }
 0x497   :  { %1902 = vmatprep.subr.bf16.mxu0 %v2036_v37 }
 0x49a   :  { %1903 = vmatpush3.bf16.msra.mxu0 %v2033_v10 }
 0x49b   :  { %1904 = vmatprep.subr.bf16.mxu0 %v2036_v37 }
 0x49e   :  { %1905 = vmatpush3.bf16.msra.mxu0 %v2034_v27 }
 0x49f   :  { %1906 = vmatprep.subr.bf16.mxu0 %v2036_v37 }
 0x4a2   :  { %1907 = vmatpush3.bf16.msra.mxu0 %v2035_v29 }
 0x568   :  { %v1223_v59 = vpop.f32.mrb[16].mxu0 }
 0x569   :  { %v1229_v61 = vpack.c.bf16 %v1223_v59, %v1223_v59  ;;  %v1868_v62 = vpop.f32.mrb[17].mxu0 }
 0x56a   :  { %v1226_v63 = vpop.f32.mrb[18].mxu0 }
 0x56b   :  { %1875 = vmatmul.mubr.msk.bf16.vlgmr.msra.gmra.mrb[20].mxu1 %vm239_vm1, %v1229_v61  ;;  %v1869_v0 = vpop.f32.mrb[19].mxu0 }
 0x56c   :  { %1879 = vmatpush3.bf16.msra.mxu1 %v2027_v60  ;;  %1882 = vmatprep.mubr.msk.bf16.mxu1 %vm2037_vm0, %v2036_v37 }
 0x56d   :  { %1880 = vmatprep.subr.bf16.mxu1 %v2036_v37 }
 0x570   :  { %1881 = vmatpush3.bf16.msra.mxu1 %v2028_v1 }
 0x571   :  { %1886 = vmatprep.subr.bf16.mxu1 %v2036_v37 }
 0x573   :  { %1883 = vmatmul.mubr.msk.bf16.vlgmr.msra.gmra.mrb[24].mxu1 %vm239_vm1, %v1229_v61 }
 0x574   :  { %1887 = vmatpush3.bf16.msra.mxu1 %v2029_v2  ;;  %1890 = vmatprep.mubr.msk.bf16.mxu1 %vm2037_vm0, %v2036_v37 }
 0x575   :  { %1888 = vmatprep.subr.bf16.mxu1 %v2036_v37 }
 0x578   :  { %1889 = vmatpush3.bf16.msra.mxu1 %v2030_v4 }
 0x579   :  { %1894 = vmatprep.subr.bf16.mxu1 %v2036_v37 }
 0x57b   :  { %1891 = vmatmul.mubr.msk.bf16.vlgmr.msra.gmra.mrb[28].mxu1 %vm239_vm1, %v1294_v7 }
 0x57c   :  { %1896 = vmatprep.mubr.msk.bf16.mxu1 %vm2037_vm0, %v2036_v37  ;;  %1895 = vmatpush3.bf16.msra.mxu1 %v2031_v8 }
 0x63e   :  { %v1288_v12 = vpop.f32.mrb[20].mxu1 }
 0x63f   :  { %v1289_v13 = vadd.f32 %v1665_v11, %v1288_v12  ;;  %v1876_v14 = vpop.f32.mrb[21].mxu1 }
 0x640   :  { %v1291_v15 = vpop.f32.mrb[22].mxu1 }
 0x641   :  { %v1410_v16 = vpack.c.bf16 %v1289_v13, %v1289_v13  ;;  %v1877_v17 = vpop.f32.mrb[23].mxu1 }
 0x643   :  { %1897 = vmatmul.mubr.msk.bf16.vlgmr.msra.gmra.mrb[32].mxu1 %vm1419_vm4, %v1410_v16 }
 0x646   :  { %v1349_v18 = vpop.f32.mrb[24].mxu1 }
 0x647   :  { %v1884_v19 = vpop.f32.mrb[25].mxu1 }
 0x648   :  { %v1352_v20 = vpop.f32.mrb[26].mxu1 }
 0x649   :  { %v1885_v21 = vpop.f32.mrb[27].mxu1 }
 0x64e   :  { %v1404_v22 = vpop.f32.mrb[28].mxu1 }
 0x64f   :  { %v1405_v23 = vadd.f32 %v1404_v22, %v1349_v18  ;;  %v1892_v24 = vpop.f32.mrb[29].mxu1 }
 0x650   :  { %v1407_v25 = vpop.f32.mrb[30].mxu1 }
 0x651   :  { %v1893_v26 = vpop.f32.mrb[31].mxu1 }
 0x716   :  { %v1457_v30 = vpop.f32.mrb[32].mxu1 }
 0x717   :  { %v1463_v32 = vadd.f32 %v1457_v30, %v1405_v23  ;;  %v1898_v33 = vpop.f32.mrb[33].mxu1 }
 0x718   :  { %v1460_v34 = vpop.f32.mrb[34].mxu1 }
 0x719   :  { %v1469_v35 = vadd.f32 %v1677_v31, %v1463_v32  ;;  %v1899_v28 = vpop.f32.mrb[35].mxu1 }
 0x71b   :  { %v1470_v36 = vmax.f32 %v1469_v35, 0.0 }
 0x71d   :  { %v1471_v38 = vpack.c.bf16 %v1470_v36, %v1470_v36 }
 0x71f   :  { %1909 = vmatmul.mubr.msk.bf16.vlgmr.msra.gmra.mrb[20].mxu0 %vm1504_vm5, %v1471_v38 }
 0x7f2   :  { %v1542_v37 = vpop.f32.mrb[20].mxu0 }
 0x7f3   :  { %v1548_v39 = vadd.f32 %v1542_v37, %v1289_v13  ;;  %v1910_v40 = vpop.f32.mrb[21].mxu0 }
 0x7f4   :  { %v1545_v41 = vpop.f32.mrb[22].mxu0 }
 0x7f5   :  { %1549 = vst [vmem:[%s2495_s4] sm:$0x3] %v1548_v39  ;;  %v1911_v42 = vpop.f32.mrb[23].mxu0 }

</bundles_post_ra>
